<compile_context>
chip_gen: v5e
topology: v5e:2x2
jax: 0.10.0
libtpu: 0.0.40
codegen_flags: <defaults>
</compile_context>

<pallas_src>
import functools

import jax
import jax.numpy as jnp
from jax.experimental import pallas as pl
from jax.experimental.pallas import tpu as pltpu

OBS_DIM = 16
GOAL_DIM = 8
HID = 32
DIM_ACTIONS = 4
BATCH = 8
X_DIM = 2 * OBS_DIM + 2 + 6   # trailing columns are ignored, like Bob.forward
GOAL_DIFF = True              # args.goal_diff
CONTINUOUS = True             # args.continuous

LANES = 128                   # lane-dense slab width
MAX_TILE = 1024               # max batch tile (8-row aligned)

# ---- packed weight-slab row layout (all offsets are multiples of 8) --------
R_W1 = 0                          # [32, 96]  layer-1 block matrix
R_W2 = R_W1 + 2 * OBS_DIM         # 32:  [96, 48]  layer-2 block matrix
R_FH = R_W2 + 3 * HID             # 128: [32, 32]  final_hid linear
R_HEAD = R_FH + HID               # 160: [32,112]  [action_mean | value | 0...]
R_B = R_HEAD + HID                # 192: bias rows (b1, b2, fh_b, head_b, pad)
W_ROWS = R_B + 8                  # 200

L1_OUT = 3 * HID                  # 96  = [te(obs_t) | te(obs_c) | oe(obs_c)]
L2_OUT = 2 * GOAL_DIM + HID       # 48  = [goal | enc | h_current + h_g]
HEAD_OUT = LANES - 2 * GOAL_DIM   # 112 (so 16 + 112 = 128 output lanes)

# ---- packed output-slab lane layout ----------------------------------------
C_GOAL = 0
C_ENC = GOAL_DIM                  # 8
C_MEAN = 2 * GOAL_DIM             # 16
C_V = C_MEAN + DIM_ACTIONS        # 20


def bob_kernel(x_ref, w_ref, out_ref):
    f32 = jnp.float32
    x = x_ref[...]                                                # [B,32] = [obs_t|obs_c]

    # ---- L1: block-diagonal matmul, shared TargetEncoder L1 + obs_enc L1 ----
    w1 = w_ref[R_W1:R_W1 + 2 * OBS_DIM, :L1_OUT]                  # [32, 96]
    b1 = w_ref[R_B:R_B + 1, :L1_OUT]                              # [1, 96]
    h1 = jnp.tanh(jnp.dot(x, w1, preferred_element_type=f32) + b1)  # [B, 96]

    # ---- L2: block matmul -> [goal | enc | h_current + h_g] -----------------
    # goal_enc is fused in via linearity (W_tg = te_w2 @ ge_w precomputed).
    w2 = w_ref[R_W2:R_W2 + 3 * HID, :L2_OUT]                      # [96, 48]
    b2 = w_ref[R_B + 1:R_B + 2, :L2_OUT]                          # [1, 48]
    z2 = jnp.dot(h1, w2, preferred_element_type=f32) + b2         # [B, 48]
    goal_enc = z2[:, :2 * GOAL_DIM]                               # [B, 16]
    h_pre = jnp.tanh(z2[:, 2 * GOAL_DIM:])                        # [B, 32]

    # ---- final_hid: (Tanh above) -> Linear -> Tanh --------------------------
    fh_w = w_ref[R_FH:R_FH + HID, :HID]
    fh_b = w_ref[R_B + 2:R_B + 3, :HID]
    h_final = jnp.tanh(jnp.dot(h_pre, fh_w, preferred_element_type=f32) + fh_b)

    # ---- fused action_mean + value head (lanes 0:5 of a 112-wide result) ----
    head_w = w_ref[R_HEAD:R_HEAD + HID, :HEAD_OUT]                # [32, 112]
    head_b = w_ref[R_B + 3:R_B + 4, :HEAD_OUT]
    hv = jnp.dot(h_final, head_w, preferred_element_type=f32) + head_b  # [B, 112]

    # ---- single unmasked 128-lane packed store -------------------------------
    out_ref[...] = jnp.concatenate([goal_enc, hv], axis=1)        # [B, 128]


def init_linear(key, fan_in, fan_out):
    """PyTorch-default-style uniform init, weight stored as [in, out]."""
    kw, kb = jax.random.split(key)
    bound = 1.0 / float(fan_in) ** 0.5
    w = jax.random.uniform(kw, (fan_in, fan_out), jnp.float32, -bound, bound)
    b = jax.random.uniform(kb, (1, fan_out), jnp.float32, -bound, bound)
    return w, b


def make_params(seed=42):
    keys = jax.random.split(jax.random.PRNGKey(seed), 9)
    te_w1, te_b1 = init_linear(keys[0], OBS_DIM, HID)
    te_w2, te_b2 = init_linear(keys[1], HID, GOAL_DIM)
    oe_w1, oe_b1 = init_linear(keys[2], OBS_DIM, HID)
    oe_w2, oe_b2 = init_linear(keys[3], HID, HID)
    ge_w, ge_b = init_linear(keys[4], GOAL_DIM, HID)
    fh_w, fh_b = init_linear(keys[5], HID, HID)
    am_w, am_b = init_linear(keys[6], HID, DIM_ACTIONS)
    als = jnp.zeros((1, DIM_ACTIONS), jnp.float32)          # action_log_std parameter
    vh_w, vh_b = init_linear(keys[7], HID, 1)
    return (te_w1, te_b1, te_w2, te_b2,
            oe_w1, oe_b1, oe_w2, oe_b2,
            ge_w, ge_b, fh_w, fh_b,
            am_w, am_b, als, vh_w, vh_b)


def pack_params(params):
    """Pack all weights + biases into ONE lane-dense [200,128] slab.

    Called once at parameter-load time (hoisted out of the per-call path).
    """
    (te_w1, te_b1, te_w2, te_b2,
     oe_w1, oe_b1, oe_w2, oe_b2,
     ge_w, ge_b, fh_w, fh_b,
     am_w, am_b, als, vh_w, vh_b) = params
    f32 = jnp.float32
    hi = jax.lax.Precision.HIGHEST
    z = lambda r, c: jnp.zeros((r, c), f32)

    # goal_enc folded in via linearity: goal @ ge_w = (h_t - h_c) @ (te_w2 @ ge_w)
    w_tg = jnp.dot(te_w2, ge_w, precision=hi)                     # [32, 32]

    # Layer-1 block matrix: [obs_t | obs_c] -> [te(obs_t) | te(obs_c) | oe(obs_c)]
    w1 = jnp.concatenate([
        jnp.concatenate([te_w1, z(OBS_DIM, HID), z(OBS_DIM, HID)], axis=1),
        jnp.concatenate([z(OBS_DIM, HID), te_w1, oe_w1], axis=1),
    ], axis=0)                                                    # [32, 96]
    b1 = jnp.concatenate([te_b1, te_b1, oe_b1], axis=1)           # [1, 96]

    # Layer-2 block matrix: [h_te_t | h_te_c | h_oe_c] -> [goal | enc | h_cur + h_g]
    if GOAL_DIFF:
        # te_b2 cancels inside goal, so the goal columns carry no bias.
        row_t = jnp.concatenate([te_w2, z(HID, GOAL_DIM), w_tg], axis=1)
        row_c = jnp.concatenate([-te_w2, te_w2, -w_tg], axis=1)
        b2_goal = z(1, GOAL_DIM)
        b2_hid = oe_b2 + ge_b
    else:
        # Linearity fusion still valid: h_g = h_goal @ ge_w + ge_b with h_goal biased.
        row_t = jnp.concatenate([te_w2, z(HID, GOAL_DIM), w_tg], axis=1)
        row_c = jnp.concatenate([z(HID, GOAL_DIM), te_w2, z(HID, HID)], axis=1)
        b2_goal = te_b2
        b2_hid = oe_b2 + ge_b + jnp.dot(te_b2, ge_w, precision=hi)
    row_o = jnp.concatenate([z(HID, GOAL_DIM), z(HID, GOAL_DIM), oe_w2], axis=1)
    w2 = jnp.concatenate([row_t, row_c, row_o], axis=0)           # [96, 48]
    b2 = jnp.concatenate([b2_goal, te_b2, b2_hid], axis=1)        # [1, 48]

    # Heads: [action_mean | value] at lanes 0:5 of a 112-wide zero-padded block.
    head_w = jnp.concatenate([am_w, vh_w, z(HID, HEAD_OUT - DIM_ACTIONS - 1)], axis=1)
    head_b = jnp.concatenate([am_b, vh_b, z(1, HEAD_OUT - DIM_ACTIONS - 1)], axis=1)

    def pad_lanes(a):
        return jnp.pad(a, ((0, 0), (0, LANES - a.shape[1])))

    bias_rows = jnp.concatenate([
        pad_lanes(b1),       # row R_B + 0
        pad_lanes(b2),       # row R_B + 1
        pad_lanes(fh_b),     # row R_B + 2
        pad_lanes(head_b),   # row R_B + 3
        jnp.zeros((4, LANES), f32),
    ], axis=0)                                                    # [8, 128]

    w_slab = jnp.concatenate([
        pad_lanes(w1),       # rows   0: 32
        pad_lanes(w2),       # rows  32:128
        pad_lanes(fh_w),     # rows 128:160
        pad_lanes(head_w),   # rows 160:192
        bias_rows,           # rows 192:200
    ], axis=0).astype(f32)                                        # [200, 128]
    return w_slab


@functools.lru_cache(maxsize=1)
def _tensorcores_per_chip():
    # Best-effort: v7x exposes 2 TensorCores per chip; earlier gens have 1.
    try:
        kind = (jax.devices()[0].device_kind or "").lower()
        if "v7" in kind or "7x" in kind:
            return 2
    except Exception:
        pass
    return 1


def _pick_batch_tile(bp, min_steps):
    """Largest 8-aligned divisor of bp that is <= MAX_TILE and leaves >= min_steps."""
    target = min(MAX_TILE, max(8, bp // max(1, min_steps)))
    t = (target // 8) * 8
    while t > 8 and bp % t:
        t -= 8
    return max(t, 8)


def _bob_forward_impl(x, w_slab, als):
    B = x.shape[0]
    # Lane-pack [obs_t | obs_c] in the wrapper: no in-kernel sublane concat/split
    # and no unaligned in-kernel lane slice of x[:, 18:34].
    obs_t = x[:, OBS_DIM + 2:2 * OBS_DIM + 2]
    obs_c = x[:, :OBS_DIM]
    xp = jnp.concatenate([obs_t, obs_c], axis=1)                  # [B, 32]

    pad_b = (-B) % 8
    if pad_b:
        xp = jnp.pad(xp, ((0, pad_b), (0, 0)))
    Bp = B + pad_b

    # >=2 "parallel" grid steps on v7x (2 TCs); max-tile heuristic elsewhere.
    min_steps = 2 if (_tensorcores_per_chip() > 1 and Bp >= 16) else 1
    tile_b = _pick_batch_tile(Bp, min_steps)

    packed = pl.pallas_call(
        bob_kernel,
        out_shape=jax.ShapeDtypeStruct((Bp, LANES), jnp.float32),
        grid=(Bp // tile_b,),
        in_specs=[
            pl.BlockSpec((tile_b, 2 * OBS_DIM), lambda i: (i, 0)),
            pl.BlockSpec((W_ROWS, LANES), lambda i: (0, 0)),
        ],
        out_specs=pl.BlockSpec((tile_b, LANES), lambda i: (i, 0)),
        compiler_params=pltpu.CompilerParams(
            dimension_semantics=("parallel",)),
    )(xp, w_slab)

    packed = packed[:B]
    goal = packed[:, C_GOAL:C_GOAL + GOAL_DIM]
    enc = packed[:, C_ENC:C_ENC + GOAL_DIM]
    mean = packed[:, C_MEAN:C_MEAN + DIM_ACTIONS]
    v = packed[:, C_V:C_V + 1]

    # action_log_std / action_std are x-independent constants -> wrapper side.
    logstd = jnp.broadcast_to(als, mean.shape)
    std = jnp.exp(logstd)
    return (mean, logstd, std), v, goal, enc


bob_forward = jax.jit(_bob_forward_impl)


def bob_forward_ref(x, params):
    """Pure-JAX reference (un-fused) for correctness checking."""
    (te_w1, te_b1, te_w2, te_b2,
     oe_w1, oe_b1, oe_w2, oe_b2,
     ge_w, ge_b, fh_w, fh_b,
     am_w, am_b, als, vh_w, vh_b) = params
    obs_c = x[:, :OBS_DIM]
    n = OBS_DIM + 2
    obs_t = x[:, n:n + OBS_DIM]

    def target_enc(o):
        return jnp.tanh(o @ te_w1 + te_b1) @ te_w2 + te_b2

    h_goal = target_enc(obs_t)
    h_cur = target_enc(obs_c)
    goal = h_goal - h_cur if GOAL_DIFF else h_goal

    h_current = jnp.tanh(obs_c @ oe_w1 + oe_b1) @ oe_w2 + oe_b2
    h_g = goal @ ge_w + ge_b
    h_final = jnp.tanh(jnp.tanh(h_current + h_g) @ fh_w + fh_b)
    v = h_final @ vh_w + vh_b
    mean = h_final @ am_w + am_b
    logstd = jnp.broadcast_to(als, mean.shape)
    return (mean, logstd, jnp.exp(logstd)), v, goal, h_cur


if __name__ == "__main__":
    params = make_params(seed=42)
    w_slab = pack_params(params)          # packed ONCE at parameter-load time
    als = params[14]
    x = jax.random.normal(jax.random.PRNGKey(0), (BATCH, X_DIM), jnp.float32)

    out = bob_forward(x, w_slab, als)
    (mean, logstd, std), v, goal, enc = jax.block_until_ready(out)
    (rmean, rlogstd, rstd), rv, rgoal, renc = bob_forward_ref(x, params)

    # Tolerance note: both the kernel and the reference use TPU default matmul
    # precision (bf16 MXU passes); the goal_enc linearity fusion reassociates
    # matmuls, so kernel-vs-reference deviations of ~1e-3..1e-2 are expected.
    # Exact fp32 parity would require precision=HIGHEST on both sides.
    for got, want in [(mean, rmean), (logstd, rlogstd), (std, rstd),
                      (v, rv), (goal, rgoal), (enc, renc)]:
        assert got.shape == want.shape, (got.shape, want.shape)
        assert jnp.allclose(got, want, atol=3e-2, rtol=3e-2), \
            float(jnp.max(jnp.abs(got - want)))

    print("KERNEL_OK")
</pallas_src>

<mosaic_0001>
module attributes {stable_mosaic.version = 11 : i64} {
  func.func @bob_kernel(%arg0: i32, %arg1: memref<8x32xf32, #tpu.memory_space<vmem>>, %arg2: memref<200x128xf32, #tpu.memory_space<vmem>>, %arg3: memref<8x128xf32, #tpu.memory_space<vmem>>) attributes {dimension_semantics = [#tpu.dimension_semantics<parallel>], iteration_bounds = array<i64: 1>, scalar_prefetch = 0 : i64, scratch_operands = 0 : i64, tpu.core_type = #tpu.core_type<tc>, window_params = [{transform_indices = @transform_0, window_bounds = array<i64: 8, 32>}, {pipeline_mode = #tpu.pipeline_mode<synchronous>, transform_indices = @transform_1, window_bounds = array<i64: 200, 128>}, {transform_indices = @transform_2, window_bounds = array<i64: 8, 128>}]} {
    %c0 = arith.constant 0 : index
    %c0_0 = arith.constant 0 : index
    %0 = vector.load %arg1[%c0, %c0_0] : memref<8x32xf32, #tpu.memory_space<vmem>>, vector<8x32xf32>
    %c0_1 = arith.constant 0 : index
    %c0_2 = arith.constant 0 : index
    %1 = vector.load %arg2[%c0_1, %c0_2] : memref<200x128xf32, #tpu.memory_space<vmem>>, vector<32x96xf32>
    %c192 = arith.constant 192 : index
    %c0_3 = arith.constant 0 : index
    %2 = vector.load %arg2[%c192, %c0_3] : memref<200x128xf32, #tpu.memory_space<vmem>>, vector<1x96xf32>
    %cst = arith.constant dense<0.000000e+00> : vector<8x96xf32>
    %3 = tpu.matmul %0, %1, %cst {dimension_numbers = #tpu.dot_dimension_numbers<[1], [0], [0], [1], [0, 0, 1, 1], [], []>} : vector<8x32xf32>, vector<32x96xf32>, vector<8x96xf32> -> vector<8x96xf32>
    %4 = vector.broadcast %2 : vector<1x96xf32> to vector<8x96xf32>
    %5 = arith.addf %3, %4 : vector<8x96xf32>
    %6 = math.tanh %5 : vector<8x96xf32>
    %c32 = arith.constant 32 : index
    %c0_4 = arith.constant 0 : index
    %7 = vector.load %arg2[%c32, %c0_4] : memref<200x128xf32, #tpu.memory_space<vmem>>, vector<96x48xf32>
    %c193 = arith.constant 193 : index
    %c0_5 = arith.constant 0 : index
    %8 = vector.load %arg2[%c193, %c0_5] : memref<200x128xf32, #tpu.memory_space<vmem>>, vector<1x48xf32>
    %cst_6 = arith.constant dense<0.000000e+00> : vector<8x48xf32>
    %9 = tpu.matmul %6, %7, %cst_6 {dimension_numbers = #tpu.dot_dimension_numbers<[1], [0], [0], [1], [0, 0, 1, 1], [], []>} : vector<8x96xf32>, vector<96x48xf32>, vector<8x48xf32> -> vector<8x48xf32>
    %10 = vector.broadcast %8 : vector<1x48xf32> to vector<8x48xf32>
    %11 = arith.addf %9, %10 : vector<8x48xf32>
    %12 = vector.extract_strided_slice %11 {offsets = [0, 0], sizes = [8, 16], strides = [1, 1]} : vector<8x48xf32> to vector<8x16xf32>
    %13 = vector.extract_strided_slice %11 {offsets = [0, 16], sizes = [8, 32], strides = [1, 1]} : vector<8x48xf32> to vector<8x32xf32>
    %14 = math.tanh %13 : vector<8x32xf32>
    %c128 = arith.constant 128 : index
    %c0_7 = arith.constant 0 : index
    %15 = vector.load %arg2[%c128, %c0_7] : memref<200x128xf32, #tpu.memory_space<vmem>>, vector<32x32xf32>
    %c194 = arith.constant 194 : index
    %c0_8 = arith.constant 0 : index
    %16 = vector.load %arg2[%c194, %c0_8] : memref<200x128xf32, #tpu.memory_space<vmem>>, vector<1x32xf32>
    %cst_9 = arith.constant dense<0.000000e+00> : vector<8x32xf32>
    %17 = tpu.matmul %14, %15, %cst_9 {dimension_numbers = #tpu.dot_dimension_numbers<[1], [0], [0], [1], [0, 0, 1, 1], [], []>} : vector<8x32xf32>, vector<32x32xf32>, vector<8x32xf32> -> vector<8x32xf32>
    %18 = vector.broadcast %16 : vector<1x32xf32> to vector<8x32xf32>
    %19 = arith.addf %17, %18 : vector<8x32xf32>
    %20 = math.tanh %19 : vector<8x32xf32>
    %c160 = arith.constant 160 : index
    %c0_10 = arith.constant 0 : index
    %21 = vector.load %arg2[%c160, %c0_10] : memref<200x128xf32, #tpu.memory_space<vmem>>, vector<32x112xf32>
    %c195 = arith.constant 195 : index
    %c0_11 = arith.constant 0 : index
    %22 = vector.load %arg2[%c195, %c0_11] : memref<200x128xf32, #tpu.memory_space<vmem>>, vector<1x112xf32>
    %cst_12 = arith.constant dense<0.000000e+00> : vector<8x112xf32>
    %23 = tpu.matmul %20, %21, %cst_12 {dimension_numbers = #tpu.dot_dimension_numbers<[1], [0], [0], [1], [0, 0, 1, 1], [], []>} : vector<8x32xf32>, vector<32x112xf32>, vector<8x112xf32> -> vector<8x112xf32>
    %24 = vector.broadcast %22 : vector<1x112xf32> to vector<8x112xf32>
    %25 = arith.addf %23, %24 : vector<8x112xf32>
    %26 = tpu.concatenate %12, %25 in 1 : vector<8x16xf32>, vector<8x112xf32> -> vector<8x128xf32>
    %c0_13 = arith.constant 0 : index
    %c0_14 = arith.constant 0 : index
    %27 = vector.load %arg3[%c0_13, %c0_14] : memref<8x128xf32, #tpu.memory_space<vmem>>, vector<8x128xf32>
    tpu.vector_store %arg3[%c0_13, %c0_14], %26 {strides = array<i32>} : memref<8x128xf32, #tpu.memory_space<vmem>>, vector<8x128xf32>,
    return
  }
  func.func @transform_0(%arg0: i32) -> (i32, i32) {
    %c0_i32 = arith.constant 0 : i32
    %c0_i32_0 = arith.constant 0 : i32
    return %arg0, %c0_i32 : i32, i32
  }
  func.func @transform_1(%arg0: i32) -> (i32, i32) {
    %c0_i32 = arith.constant 0 : i32
    %c0_i32_0 = arith.constant 0 : i32
    %c0_i32_1 = arith.constant 0 : i32
    return %c0_i32, %c0_i32_0 : i32, i32
  }
  func.func @transform_2(%arg0: i32) -> (i32, i32) {
    %c0_i32 = arith.constant 0 : i32
    %c0_i32_0 = arith.constant 0 : i32
    return %arg0, %c0_i32 : i32, i32
  }
}

</mosaic_0001>

<bundles_post_ra>
// kernel: _bob_forward_impl.1
= control target key start
LH: loop header
LB: loop body
LE: loop exit
PB: predicated region body
PF: predicated region fallthrough
CT: control target
= control target key end

     0   :  { %7 = vsyncpa [#allocation3], 0  ;;  %s216_s12 = smov [#allocation2]   ;;  %s217_s14 = smov 128   ;;  %s248_s0 = inlined_call_operand.vmem [shape: f32[8,32], index: 0, kind: input, shape index: {}]   ;;  %s249_s1 = inlined_call_operand.hbm [shape: f32[200,128], index: 1, kind: input, shape index: {}]   ;;  %s250_s2 = inlined_call_operand.vmem [shape: f32[8,128], index: 2, kind: output, shape index: {}]  }
   0x1   :  { %s14_s11 = sshll.u32 %s249_s1, 4  ;;  %s16_s13 = sshll.u32 %s216_s12, 4  ;;  %s15_s11 = int_to_ptr.hbm [resolvable:$true] %s14_s11  ;;  %s17_s13 = int_to_ptr.vmem [resolvable:$true] %s16_s13 }
   0x2   :  { %s218_s15 = smov 8  }
   0x3   :  { %22 = dma.hbm_to_vmem [thread:$0]  %s15_s11, 3200, %s17_s13, [#allocation3], %s217_s14, %s217_s14, %s218_s15  }
   0x4   :  { %214 = dma.done.wait [#allocation3], 3200  }
   0x5   :  { %215 = vsyncadd [#allocation3], 4294964096  ;;  %v31_v0 = vld [vmem:[#allocation2 + $0x18] sm:$0xff]  ;;  %v30_v1 = vld [vmem:[#allocation2 + $0x10] sm:$0xff]  ;;  %vm34_vm0 = vcmask 261120   ;;  %vm73_vm1 = vcmask 785408  }
   0x6   :  { %50 = vmatpush.msra.mxu0 %v31_v0  ;;  %v70_v2 = vld [vmem:[#allocation2 + $0x78] sm:$0xff]  ;;  %v29_v3 = vld [vmem:[#allocation2 + $0x8] sm:$0xff]  ;;  %v69_v4 = vld [vmem:[#allocation2 + $0x70] sm:$0xff]  ;;  %s220_s17 = smov 16   ;;  %vm163_vm2 = vcmask 130048  }
   0x7   :  { %81 = vmatpush.msra.mxu1 %v70_v2  ;;  %v28_v5 = vld [vmem:[#allocation2] sm:$0xff]  ;;  %v68_v6 = vld [vmem:[#allocation2 + $0x68] sm:$0xff]  ;;  %v66_v9 = vld [vmem:[#allocation2 + $0x58] sm:$0xff] }
   0x8   :  { %51 = vmatpush.msra.mxu0 %v30_v1  ;;  %v27_v7 = vld [vmem:[%s248_s0] sm:$0xff]  ;;  %v65_v10 = vld [vmem:[#allocation2 + $0x50] sm:$0xff]  ;;  %v64_v11 = vld [vmem:[#allocation2 + $0x48] sm:$0xff]  ;;  %s219_s0 = smov 112  }
   0x9   :  { %82 = vmatpush.msra.mxu1 %v69_v4  ;;  %v67_v8 = vld [vmem:[#allocation2 + $0x60] sm:$0xff]  ;;  %v62_v13 = vld [vmem:[#allocation2 + $0x38] sm:$0xff]  ;;  %v61_v14 = vld [vmem:[#allocation2 + $0x30] sm:$0xff] }
   0xa   :  { %52 = vmatpush.msra.mxu0 %v29_v3  ;;  %v63_v12 = vld [vmem:[#allocation2 + $0x40] sm:$0xff]  ;;  %v60_v15 = vld [vmem:[#allocation2 + $0x28] sm:$0xff]  ;;  %v101_v21 = vld [vmem:[#allocation2 + $0x98] sm:$0xff] }
   0xb   :  { %83 = vmatpush.msra.mxu1 %v68_v6  ;;  %v59_v16 = vld [vmem:[#allocation2 + $0x20] sm:$0xff]  ;;  %v100_v22 = vld [vmem:[#allocation2 + $0x90] sm:$0xff]  ;;  %121 = vmatpush.msra.mxu2 %v101_v21  ;;  %v99_v23 = vld [vmem:[#allocation2 + $0x88] sm:$0xff] }
   0xc   :  { %53 = vmatpush.msra.mxu0 %v28_v5  ;;  %v180_v17 = vld [vmem:[#allocation2 + $0xc0] ss:$0 sm:$0xff]  ;;  %v181_v25 = vld [vmem:[#allocation2 + $0xc1] ss:$0 sm:$0xff]  ;;  %v133_v30 = vld [vmem:[#allocation2 + $0xb8] sm:$0xff] }
   0xd   :  { %171 = vmatmul.msk.f32.vlgmr.msra.gmra.mxu0 %vm34_vm0, %v27_v7  ;;  %84 = vmatpush.msra.mxu1 %v67_v8  ;;  %v98_v24 = vld [vmem:[#allocation2 + $0x80] sm:$0xff]  ;;  %v132_v31 = vld [vmem:[#allocation2 + $0xb0] sm:$0xff]  ;;  %v131_v32 = vld [vmem:[#allocation2 + $0xa8] sm:$0xff] }
   0xe   :  { %122 = vmatpush.msra.mxu2 %v100_v22  ;;  %151 = vmatpush.msra.mxu3 %v133_v30  ;;  %v130_v33 = vld [vmem:[#allocation2 + $0xa0] sm:$0xff] }
   0xf   :  { %85 = vmatpush.msra.mxu1 %v66_v9  ;;  %v182_v34 = vld [vmem:[#allocation2 + $0xc2] ss:$0 sm:$0xff]  ;;  %v183_v38 = vld [vmem:[#allocation2 + $0xc3] ss:$0 sm:$0xff] }
  0x10   :  { %123 = vmatpush.msra.mxu2 %v99_v23  ;;  %152 = vmatpush.msra.mxu3 %v132_v31 }
  0x11   :  { %86 = vmatpush.msra.mxu1 %v65_v10 }
  0x12   :  { %124 = vmatpush.msra.mxu2 %v98_v24  ;;  %153 = vmatpush.msra.mxu3 %v131_v32 }
  0x13   :  { %87 = vmatpush.msra.mxu1 %v64_v11 }
  0x14   :  { %154 = vmatpush.msra.mxu3 %v130_v33 }
  0x15   :  { %88 = vmatpush.msra.mxu1 %v63_v12 }
  0x17   :  { %89 = vmatpush.msra.mxu1 %v62_v13 }
  0x19   :  { %90 = vmatpush.msra.mxu1 %v61_v14 }
  0x1b   :  { %91 = vmatpush.msra.mxu1 %v60_v15 }
  0x1d   :  { %92 = vmatpush.msra.mxu1 %v59_v16 }
  0x8a   :  { %v55_v18 = vpop.f32.mrf.mxu0 }
  0x8b   :  { %v56_v19 = vadd.f32 %v180_v17, %v55_v18 }
  0x8d   :  { %184 = vtanh.f32 %v56_v19 }
  0x93   :  { %v185_v20 = vpop.eup %184 }
  0x94   :  { %172 = vmatmul.msk.f32.vlgmr.msra.gmra.mxu1 %vm73_vm1, %v185_v20 }
 0x111   :  { %v94_v26 = vpop.f32.mrf.mxu1 }
 0x112   :  { %v95_v27 = vadd.f32 %v181_v25, %v94_v26 }
 0x114   :  { %186 = vtanh.f32 %v95_v27 }
 0x11a   :  { %v187_v28 = vpop.eup %186 }
 0x11b   :  { %105 = vrot.lane.b32.xlu0 %v187_v28, %s219_s0 }
 0x18d   :  { %v106_v29 = vpop.permute.xlu0 %105 }
 0x18e   :  { %173 = vmatmul.msk.f32.vlgmr.msra.gmra.mxu2 %vm34_vm0, %v106_v29 }
 0x211   :  { %v126_v35 = vpop.f32.mrf.mxu2 }
 0x212   :  { %v127_v36 = vadd.f32 %v182_v34, %v126_v35 }
 0x214   :  { %188 = vtanh.f32 %v127_v36 }
 0x21a   :  { %v189_v37 = vpop.eup %188 }
 0x21b   :  { %174 = vmatmul.msk.f32.vlgmr.msra.gmra.mxu3 %vm34_vm0, %v189_v37 }
 0x29e   :  { %v156_v39 = vpop.f32.mrf.mxu3 }
 0x29f   :  { %v157_v40 = vadd.f32 %v183_v38, %v156_v39 }
 0x2a1   :  { %160 = vrot.lane.b32.xlu0 %v157_v40, %s220_s17 }
 0x313   :  { %v161_v41 = vpop.permute.xlu0 %160 }
 0x314   :  { %v164_v42 = vsel %vm163_vm2, %v95_v27, %v161_v41 }
 0x315   :  { %165 = vst [vmem:[%s250_s2] sm:$0xff] %v164_v42 }
 0x316   :  { %170 = vsyncpa [#allocation3], 1 }

</bundles_post_ra>
